<compile_context>
chip_gen: v7x
topology: tpu7x:2x2x1
jax: 0.10.0
libtpu: 0.0.40
codegen_flags: <defaults>
</compile_context>

<pallas_src>
import jax
import jax.numpy as jnp
from jax.experimental import pallas as pl
from jax.experimental.pallas import tpu as pltpu


_TARGET_BLOCK_BYTES = 2 * 1024 * 1024      # ~2 MiB of input per grid step
_FALLBACK_BYTES = 1 * 1024 * 1024          # below this, skip Pallas entirely
_VMEM_LIMIT_BYTES = 32 * 1024 * 1024       # fits v5e/v6e/v7x with double-buffering


def _largest_divisor_leq(n, cap, multiple=1):
    """Largest d with d | n, d <= cap, d % multiple == 0. Returns 0 if none."""
    best = 0
    d = 1
    while d * d <= n:
        if n % d == 0:
            for cand in (d, n // d):
                if cand <= cap and cand % multiple == 0 and cand > best:
                    best = cand
        d += 1
    return best


def _null_disc_kernel(x_ref, o_ref):
    # x_ref: (TB, C, TL) VMEM tile; o_ref: (TB, 1, TL)
    C = x_ref.shape[1]
    if C <= 8:
        # Unrolled per-channel VPU adds; f32 accumulation.
        acc = x_ref[:, 0, :].astype(jnp.float32)
        for c in range(1, C):
            acc = acc + x_ref[:, c, :].astype(jnp.float32)
    else:
        # Sublane (XLU) reduce — still off the DMA critical path for this
        # memory-bound kernel.
        acc = jnp.sum(x_ref[...].astype(jnp.float32), axis=1)
    o_ref[...] = acc[:, None, :].astype(o_ref.dtype)


def null_discriminator(x, y=None, *, force_pallas=False):
    """Pallas implementation of NullDiscriminator.forward.

    x: [B, C, H, W] -> [B, 1, H, W]   (sum over channel dim, keepdim=True)
    `y` is accepted and ignored, matching the PyTorch signature.
    """
    del y
    B, C, H, W = x.shape
    itemsize = jnp.dtype(x.dtype).itemsize
    total_bytes = B * C * H * W * itemsize

    # Tiny inputs: pallas_call fixed cost dwarfs the traffic; let XLA fuse it.
    if not force_pallas and total_bytes < _FALLBACK_BYTES:
        return jnp.sum(x, axis=1, keepdims=True)

    HW = H * W
    x2 = x.reshape(B, C, HW)  # lane-dense view; free for contiguous NCHW data

    # Lane tile: multiple of 128 dividing HW (unmasked vst), else full extent.
    if HW % 128 == 0:
        lane_cap = max(128, _TARGET_BLOCK_BYTES // (C * itemsize))
        TL = _largest_divisor_leq(HW, lane_cap, multiple=128) or HW
    else:
        TL = HW  # full array dim satisfies the (8,128) block constraint

    # Batch tile: divisor of B, block bytes near target; keep >=2 batch steps
    # when possible so v7x's two TensorCores both get work.
    per_row_bytes = C * TL * itemsize
    tb_cap = max(1, _TARGET_BLOCK_BYTES // per_row_bytes)
    tb_cap = min(tb_cap, max(1, B // 2)) if B >= 2 else 1
    TB = _largest_divisor_leq(B, tb_cap, multiple=1) or 1

    grid = (B // TB, HW // TL)

    out = pl.pallas_call(
        _null_disc_kernel,
        out_shape=jax.ShapeDtypeStruct((B, 1, HW), x.dtype),
        grid_spec=pl.GridSpec(
            grid=grid,
            in_specs=[
                pl.BlockSpec((TB, C, TL), lambda b, l: (b, 0, l)),
            ],
            out_specs=pl.BlockSpec((TB, 1, TL), lambda b, l: (b, 0, l)),
        ),
        compiler_params=pltpu.CompilerParams(
            dimension_semantics=("parallel", "parallel"),
            vmem_limit_bytes=_VMEM_LIMIT_BYTES,
        ),
    )(x2)

    return out.reshape(B, 1, H, W)


if __name__ == "__main__":
    key = jax.random.PRNGKey(0)
    k1, k2 = jax.random.split(key)

    # 1) Canonical small shape — auto dispatch (takes the fused-XLA fallback).
    x_small = jax.random.normal(k1, (2, 4, 16, 16), dtype=jnp.float32)
    out_small = jax.block_until_ready(null_discriminator(x_small))
    ref_small = jnp.sum(x_small, axis=1, keepdims=True)
    assert out_small.shape == (2, 1, 16, 16), out_small.shape
    assert jnp.allclose(out_small, ref_small, atol=1e-5, rtol=1e-5), "small mismatch"

    # 2) Same small shape forced through the Pallas kernel (exercise kernel path).
    out_small_p = jax.block_until_ready(
        null_discriminator(x_small, force_pallas=True))
    assert out_small_p.shape == (2, 1, 16, 16), out_small_p.shape
    assert jnp.allclose(out_small_p, ref_small, atol=1e-5, rtol=1e-5), \
        "forced-pallas small mismatch"

    # 3) Larger lane-dense shape that takes the Pallas path naturally
    #    (HW = 16384, multiple of 128; ~1.5 MiB total; grid = (2, 1)).
    x_big = jax.random.normal(k2, (8, 3, 128, 128), dtype=jnp.float32)
    out_big = jax.block_until_ready(null_discriminator(x_big))
    ref_big = jnp.sum(x_big, axis=1, keepdims=True)
    assert out_big.shape == (8, 1, 128, 128), out_big.shape
    assert jnp.allclose(out_big, ref_big, atol=1e-4, rtol=1e-5), "big mismatch"

    print("KERNEL_OK")
</pallas_src>

<mosaic_0001>
module attributes {stable_mosaic.version = 11 : i64} {
  func.func @_null_disc_kernel(%arg0: i32, %arg1: i32, %arg2: memref<1x4x256xf32, #tpu.memory_space<vmem>>, %arg3: memref<1x1x256xf32, #tpu.memory_space<vmem>>) attributes {dimension_semantics = [#tpu.dimension_semantics<parallel>, #tpu.dimension_semantics<parallel>], iteration_bounds = array<i64: 2, 1>, scalar_prefetch = 0 : i64, scratch_operands = 0 : i64, tpu.core_type = #tpu.core_type<tc>, window_params = [{transform_indices = @transform_0, window_bounds = array<i64: 1, 4, 256>}, {transform_indices = @transform_1, window_bounds = array<i64: 1, 1, 256>}]} {
    %c0 = arith.constant 0 : index
    %c0_0 = arith.constant 0 : index
    %c0_1 = arith.constant 0 : index
    %0 = vector.load %arg2[%c0, %c0_0, %c0_1] : memref<1x4x256xf32, #tpu.memory_space<vmem>>, vector<1x1x256xf32>
    %1 = vector.shape_cast %0 : vector<1x1x256xf32> to vector<1x256xf32>
    %c0_2 = arith.constant 0 : index
    %c1 = arith.constant 1 : index
    %c0_3 = arith.constant 0 : index
    %2 = vector.load %arg2[%c0_2, %c1, %c0_3] : memref<1x4x256xf32, #tpu.memory_space<vmem>>, vector<1x1x256xf32>
    %3 = vector.shape_cast %2 : vector<1x1x256xf32> to vector<1x256xf32>
    %4 = arith.addf %1, %3 : vector<1x256xf32>
    %c0_4 = arith.constant 0 : index
    %c2 = arith.constant 2 : index
    %c0_5 = arith.constant 0 : index
    %5 = vector.load %arg2[%c0_4, %c2, %c0_5] : memref<1x4x256xf32, #tpu.memory_space<vmem>>, vector<1x1x256xf32>
    %6 = vector.shape_cast %5 : vector<1x1x256xf32> to vector<1x256xf32>
    %7 = arith.addf %4, %6 : vector<1x256xf32>
    %c0_6 = arith.constant 0 : index
    %c3 = arith.constant 3 : index
    %c0_7 = arith.constant 0 : index
    %8 = vector.load %arg2[%c0_6, %c3, %c0_7] : memref<1x4x256xf32, #tpu.memory_space<vmem>>, vector<1x1x256xf32>
    %9 = vector.shape_cast %8 : vector<1x1x256xf32> to vector<1x256xf32>
    %10 = arith.addf %7, %9 : vector<1x256xf32>
    %11 = vector.shape_cast %10 : vector<1x256xf32> to vector<1x1x256xf32>
    %c0_8 = arith.constant 0 : index
    %c0_9 = arith.constant 0 : index
    %c0_10 = arith.constant 0 : index
    %12 = vector.load %arg3[%c0_8, %c0_9, %c0_10] : memref<1x1x256xf32, #tpu.memory_space<vmem>>, vector<1x1x256xf32>
    tpu.vector_store %arg3[%c0_8, %c0_9, %c0_10], %11 {strides = array<i32>} : memref<1x1x256xf32, #tpu.memory_space<vmem>>, vector<1x1x256xf32>,
    return
  }
  func.func @transform_0(%arg0: i32, %arg1: i32) -> (i32, i32, i32) {
    %c0_i32 = arith.constant 0 : i32
    %c0_i32_0 = arith.constant 0 : i32
    return %arg0, %c0_i32, %arg1 : i32, i32, i32
  }
  func.func @transform_1(%arg0: i32, %arg1: i32) -> (i32, i32, i32) {
    %c0_i32 = arith.constant 0 : i32
    %c0_i32_0 = arith.constant 0 : i32
    return %arg0, %c0_i32, %arg1 : i32, i32, i32
  }
}

</mosaic_0001>

<bundles_post_ra>
// kernel: tpu_custom_call.1
= control target key start
LH: loop header
LB: loop body
LE: loop exit
PB: predicated region body
PF: predicated region fallthrough
CT: control target
= control target key end

     0   :  { %6 = vsyncpa [#allocation3], 0  ;;  %s650_s0 = inlined_call_operand.hbm [shape: f32[2,4,256], index: 0, kind: input, shape index: {}]   ;;  %s651_s1 = inlined_call_operand.hbm [shape: f32[2,1,256], index: 1, kind: output, shape index: {}]  }
   0x1   :  { %8 = vsyncpa [#allocation3 + $0x1], 0 }
   0x2   :  { %9 = vsyncpa [#allocation4], 0 }
   0x3   :  { %11 = vsyncpa [#allocation4 + $0x1], 0  ;;  %s477_s6 = smov 0   ;;  %s479_s7 = smov 0  }
   0x4   :  { %s481_s8 = smov 0   ;;  %s483_s9 = smov 0  }
   0x5   :  { %s485_s10 = smov 0   ;;  %s487_s11 = smov 0  }
   0x6 LB: > { %s269_s12 = sadd.s32 4294967295, %s463_s11   ;;  %s270_s13 = sadd.s32 4294967294, %s463_s11   ;;  %s463_s11 = sphi %s487_s11, %s17_s11   ;;  %s459_s10 = sphi %s485_s10, %s667_s10   ;;  %s455_s9 = sphi %s483_s9, %s666_s9   ;;  %s451_s8 = sphi %s481_s8, %s665_s8   ;;  %s447_s7 = sphi %s479_s7, %s664_s7   ;;  %s443_s6 = sphi %s477_s6, %s663_s6  }
   0x7   : > { %s29_s14 = sadd.s32 1, %s459_s10  ;;  %s38_s15 = sadd.s32 1, %s451_s8 }
   0x8   : > { %p31_p0 = scmp.ge.s32.totalorder %s29_s14, 2  ;;  %p45_p1 = scmp.ne.s32.totalorder %s451_s8, %s447_s7 }
   0x9   : > { %p46_p2 = scmp.eq.s32.totalorder %s463_s11, 0  ;;  %p51_p3 = scmp.ne.s32.totalorder %s447_s7, %s443_s6 }
   0xa   : > { %s669_s14 = smov (%p31_p0, %s29_s14), 0  ;;  %p52_p5 = scmp.eq.s32.totalorder %s269_s12, 0 }
   0xb   : > { %p518_p4 = por %p46_p2, %p45_p1  ;;  %s33_s17 = ssub.s32 %s459_s10, %s669_s14 }
   0xc   : > { %p77_p6 = scmp.eq.s32.totalorder %s269_s12, 1  ;;  %p36_p7 = scmp.eq.s32.totalorder %s33_s17, 0 }
   0xd   : > { %p524_p8 = por %p52_p5, %p51_p3  ;;  %p83_p10 = scmp.eq.s32.totalorder %s270_s13, 1 }
   0xe   : > { %p528_p9 = por %p77_p6, %p45_p1  ;;  %p301_p13 = scmp.lt.s32.totalorder %s463_s11, 2 }
   0xf   : > { %s533_s20 = scalar_select %p36_p7, %s451_s8, %s38_s15  }
  0x10   : > { %s655_s19 = scalar_select %p528_p9, 1, 0 }
  0x11   : > { %p535_p11 = por %p83_p10, %p51_p3  ;;  %s103_s22 = sand.u32 1, %s451_s8  }
  0x12   : > { %s273_s23 = sshll.u32 %s103_s22, 3  ;;  %s287_s24 = sshll.u32 %s459_s10, 7 }
  0x13   : > { %s656_s21 = scalar_select %p535_p11, 1, 0 }
  0x14   : > { %s546_s27 = scalar_lea.hbm %s650_s0, %s287_s24  ;;  %s107_s28 = scalar_lea.vmem [#allocation2], %s273_s23 }
  0x15   : > { %s117_s29 = sshll.u32 %s107_s28, 4  ;;  %p552_p0 = pnand %p301_p13, %p518_p4  ;;  %s548_s29 = int_to_ptr.vmem [resolvable:$true] %s117_s29 }
  0x16   : > { %s104_s2 = scalar_lea.sflag [#allocation3], %s103_s22  ;;  %s351_s3 = scalar_lea.hbm %s546_s27, 128 }
  0x17   : > { %p352_p3 = scmp.ne.s32.totalorder %s546_s27, %s351_s3  ;;  %p353_p5 = pneg %p552_p0 }
  0x18   : > { %s356_s12 = scalar_lea.hbm %s650_s0, 256  ;;  %p357_p4 = scmp.lt.u32.totalorder %s546_s27, %s650_s0 }
  0x19   : > { %p354_p6 = pnand %p353_p5, %p352_p3  ;;  %p358_p10 = scmp.lt.u32.totalorder %s356_s12, %s351_s3 }
  0x1a   : > { %p360_p12 = scmp.lt.u32.totalorder %s351_s3, %s546_s27 }
  0x1b   : > { %p355_p7 = pneg %p354_p6  ;;  %p359_p13 = por %p358_p10, %p357_p4 }
  0x1d   : > { %p361_p1 = por %p360_p12, %p359_p13 }
  0x1f   : > { %p362_p2 = pnand %p361_p1, %p355_p7 }
  0x21   : > { %365 = shalt.err (!%p362_p2)
}
  0x22   : > { %s366_s16 = scalar_lea.vmem %s548_s29, 128  ;;  %s465_s17 = smov [#allocation2]  }
  0x23   : > { %p367_p3 = scmp.ne.s32.totalorder %s548_s29, %s366_s16  ;;  %s371_s22 = sshll.u32 %s465_s17, 4  ;;  %s372_s22 = int_to_ptr.vmem [resolvable:$false] %s371_s22 }
  0x24   : > { %s373_s23 = scalar_lea.vmem %s372_s22, 256  ;;  %p374_p9 = scmp.lt.s32.totalorder %s548_s29, %s372_s22 }
  0x25   : > { %p369_p6 = pnand %p367_p3, %p353_p5  ;;  %p375_p4 = scmp.lt.s32.totalorder %s373_s23, %s366_s16 }
  0x27   : > { %p370_p11 = pneg %p369_p6  ;;  %p376_p10 = por %p375_p4, %p374_p9 }
  0x29   : > { %p377_p12 = pnand %p376_p10, %p370_p11 }
  0x2b   : > { %380 = shalt.err (!%p377_p12)
}
  0x2c   : > { %296 = dma.hbm_to_vmem [thread:$0]  (!%p552_p0), %s546_s27, 128, %s548_s29, %s104_s2  }
  0x2d   : > { %p658_p1 = scmp.lt.s32.totalorder %s463_s11, 3  ;;  %p659_p2 = scmp.ge.s32.totalorder %s463_s11, 1 }
  0x2f   : > { %p123_p5 = pnand %p659_p2, %p658_p1 }
  0x30   : > { %s588_s24 = sand.u32 (!%p123_p5), 1, %s447_s7  }
  0x31   : > { %126 = sbr.rel (%p123_p5) target bundleno = 83 (0x53), region = 24  ;;  %s277_s25 = sshll.u32 (!%p123_p5), %s588_s24, 3 }
  0x32   : > { %s129_s26 = scalar_lea.sflag (!%p123_p5), [#allocation3], %s588_s24  ;;  %s132_s28 = scalar_lea.vmem (!%p123_p5), [#allocation2], %s277_s25 }
  0x38   : > { %434 = dma.done.wait (%p524_p8), %s129_s26, 128  }
  0x39   : > { %436 = vsyncadd (%p524_p8), %s129_s26, 4294967168  ;;  %s278_s27 = sshll.u32 %s588_s24, 1  ;;  %v153_v0 = vld [vmem:[%s132_s28] ss:$4 sm:$0x3]  ;;  %v163_v2 = vlaneseq  ;;  %s288_s2 = sshll.u32 %s455_s9, 5 }
  0x3a   : > { %v279_v1 = vld [vmem:[%s132_s28 + $0x1] ss:$4 sm:$0x3]  ;;  %v280_v4 = vld [vmem:[%s132_s28 + $0x2] ss:$4 sm:$0x3]  ;;  %s603_s4 = scalar_lea.hbm %s651_s1, %s288_s2 }
  0x3b   : > { %v156_v3 = vadd.f32 %v279_v1, %v153_v0  ;;  %v281_v5 = vld [vmem:[%s132_s28 + $0x3] ss:$4 sm:$0x3]  ;;  %s150_s29 = scalar_lea.vmem [#allocation5], %s278_s27  ;;  %vm165_vm0 = vcmp.lt.s32.totalorder %v163_v2, 256  ;;  %s169_s5 = scalar_lea.sflag [#allocation4], %s588_s24 }
  0x3c   : > { %s185_s30 = sshll.u32 %s150_s29, 4  ;;  %p660_p9 = scmp.ne.s32.totalorder %s655_s19, 0  ;;  %s598_s30 = int_to_ptr.vmem [resolvable:$true] %s185_s30 }
  0x3d   : > { %v159_v6 = vadd.f32 %v280_v4, %v156_v3  ;;  %s381_s12 = scalar_lea.vmem %s598_s30, 32  ;;  %s466_s9 = smov [#allocation5]  }
  0x3e   : > { %p382_p8 = scmp.ne.s32.totalorder %s598_s30, %s381_s12  ;;  %s385_s13 = sshll.u32 %s466_s9, 4  ;;  %s386_s13 = int_to_ptr.vmem [resolvable:$false] %s385_s13 }
  0x3f   : > { %v162_v7 = vadd.f32 %v281_v5, %v159_v6  ;;  %s387_s15 = scalar_lea.vmem %s386_s13, 64  ;;  %p388_p7 = scmp.lt.s32.totalorder %s598_s30, %s386_s13 }
  0x40   : > { %p383_p11 = pnand %p382_p8, %p660_p9  ;;  %p389_p13 = scmp.lt.s32.totalorder %s387_s15, %s381_s12 }
  0x41   : > { %167 = vst.msk [vmem:[%s150_s29] sm:$0x3] %vm165_vm0, %v162_v7 }
  0x42   : > { %p384_p0 = pneg %p383_p11  ;;  %p390_p3 = por %p389_p13, %p388_p7 }
  0x44   : > { %p391_p6 = pnand %p390_p3, %p384_p0 }
  0x46   : > { %394 = shalt.err (!%p391_p6)
}
  0x47   : > { %s395_s16 = scalar_lea.hbm %s603_s4, 32  ;;  %s399_s23 = scalar_lea.hbm %s651_s1, 64 }
  0x48   : > { %p396_p4 = scmp.ne.s32.totalorder %s603_s4, %s395_s16  ;;  %p400_p1 = scmp.lt.u32.totalorder %s603_s4, %s651_s1 }
  0x49   : > { %p401_p2 = scmp.lt.u32.totalorder %s399_s23, %s395_s16  ;;  %p403_p8 = scmp.lt.u32.totalorder %s395_s16, %s603_s4 }
  0x4a   : > { %p397_p10 = pnand %p396_p4, %p660_p9 }
  0x4b   : > { %p402_p5 = por %p401_p2, %p400_p1 }
  0x4c   : > { %p398_p12 = pneg %p397_p10 }
  0x4d   : > { %p404_p11 = por %p403_p8, %p402_p5 }
  0x4f   : > { %p405_p0 = pnand %p404_p11, %p398_p12 }
  0x51   : > { %408 = shalt.err (!%p405_p0)
}
  0x52   : > { %291 = dma.vmem_to_hbm [thread:$0]  (%p660_p9), %s598_s30, 32, %s603_s4, %s169_s5  }
  0x53 PF: > { %s197_s26 = sand.u32 1, %s443_s6   ;;  %p661_p7 = scmp.ne.s32.totalorder %s656_s21, 0 }
  0x54   : > { %p662_p13 = scmp.ge.s32.totalorder %s463_s11, 2  ;;  %s198_s28 = scalar_lea.sflag [#allocation4], %s197_s26 }
  0x56   : > { %p298_p3 = pnand %p662_p13, %p661_p7 }
  0x58   : > { %438 = dma.done.wait (!%p298_p3), %s198_s28, 32  }
  0x59   : > { %440 = vsyncadd (!%p298_p3), %s198_s28, 4294967264  ;;  %s17_s11 = sadd.s32 1, %s463_s11   ;;  %s663_s6 = smov %s447_s7 }
  0x5a   : > { %p14_p6 = scmp.ge.s32.totalorder %s17_s11, 4   ;;  %s664_s7 = smov %s451_s8 }
  0x5b   : > { %s665_s8 = smov %s533_s20  ;;  %s666_s9 = smov %s459_s10 }
  0x5c   : > { %s667_s10 = smov %s669_s14  ;;  %16 = sbr.rel (!%p14_p6) target bundleno = 6 (0x6), region = 72 }
  0x63   :  { %203 = vsyncpa [#allocation3], 1 }
  0x64   :  { %205 = vsyncpa [#allocation3 + $0x1], 1 }
  0x65   :  { %206 = vsyncpa [#allocation4], 1 }
  0x66   :  { %208 = vsyncpa [#allocation4 + $0x1], 1 }

</bundles_post_ra>
